<compile_context>
chip_gen: v7x
topology: tpu7x:2x2x1
jax: 0.10.0
libtpu: 0.0.40
codegen_flags: <defaults>
</compile_context>

<pallas_src>
import functools

import numpy as np
import jax
import jax.numpy as jnp
from jax.experimental import pallas as pl
from jax.experimental.pallas import tpu as pltpu


def _convrnn_cell_kernel(x_ref, h_ref, wih_ref, whh_ref, b_ref, o_ref,
                         *, nonlinearity, compute_dtype):
    # x_ref  : (C_in, TS)  input-channel tile, native dtype
    # h_ref  : (H,   TS)   hidden-channel tile, native dtype
    # wih_ref: (H, C_in)   transposed 1x1-conv weight
    # whh_ref: (H, H)      transposed 1x1-conv weight
    # b_ref  : (H, 1)      pre-summed bias (b_ih + b_hh), f32
    # o_ref  : (H, TS)     lane-dense output tile
    cd = compute_dtype
    pre = jnp.dot(wih_ref[...].astype(cd), x_ref[...].astype(cd),
                  preferred_element_type=jnp.float32)
    pre = pre + jnp.dot(whh_ref[...].astype(cd), h_ref[...].astype(cd),
                        preferred_element_type=jnp.float32)
    pre = pre + b_ref[...]
    if nonlinearity == "tanh":
        act = jnp.tanh(pre)
    else:  # "relu" (validated in the wrapper)
        act = jnp.maximum(pre, 0.0)
    o_ref[...] = act.astype(o_ref.dtype)


def _pick_spatial_tile(S, N, target):
    """Largest lane-dense (128-multiple) spatial tile <= target.

    Guarantees >= 2 total grid steps where possible (v7x has 2 TensorCores).
    For S that is not a multiple of the tile, the grid uses cdiv and Pallas
    pads/masks the last block (output columns beyond S are never stored)."""
    if S <= 128:
        return S                                   # full extent (always legal)
    if S <= target:
        if N >= 2:
            return S                               # batch axis gives >= 2 steps
        # N == 1: split spatially into 2 lane-dense tiles for v7x megacore.
        return -(-((S + 1) // 2) // 128) * 128
    # S > target: biggest 128-multiple <= target, preferring an exact divisor.
    tile = (target // 128) * 128
    t = tile
    while t >= 128:
        if S % t == 0:
            return t
        t -= 128
    return tile


def _vmem_limit_bytes(C_in, H, tile_s, in_bytes, out_bytes):
    """Rough per-step working set (double-buffered I/O + f32 intermediates)."""
    per_step_in = (C_in + H) * tile_s * in_bytes
    per_step_out = H * tile_s * out_bytes
    interm = 2 * H * tile_s * 4
    weights = (C_in * H + H * H + H) * 4
    est = 2 * (per_step_in + per_step_out) + interm + weights
    # Headroom, floored at the default scoped limit, capped at v7x physical.
    return int(min(max(2 * est, 32 << 20), 64 << 20))


def convrnn_cell(x_nchw, hx_nchw, w_ih, w_hh, b_ih, b_hh, *,
                 nonlinearity="tanh", compute_dtype=jnp.bfloat16,
                 out_dtype=None, spatial_tile_target=16384):
    """PyTorch-semantics forward. x: (N, C_in, Hs, Ws), hx: (N, H, Hs, Ws).

    w_ih: (C_in, H), w_hh: (H, H) -- the 1x1 Conv2d weights reshaped to
    (in_channels, out_channels). b_ih, b_hh: (1, H).
    """
    if nonlinearity not in ("tanh", "relu"):
        raise RuntimeError(f"Unknown nonlinearity: {nonlinearity}")

    N, C_in, Hs, Ws = x_nchw.shape
    H = hx_nchw.shape[1]
    S = Hs * Ws
    out_dtype = x_nchw.dtype if out_dtype is None else out_dtype

    # Channel-major, spatial-last layout: free reshapes (no transpose, no copy,
    # no fused-xh materialization in HBM).
    x_r = x_nchw.reshape(N, C_in, S)
    h_r = hx_nchw.reshape(N, H, S)

    # Transposed 1x1-conv weights: out[h, s] = sum_c w_t[h, c] * in[c, s].
    w_ih_t = jnp.asarray(w_ih).T                       # (H, C_in) -- tiny
    w_hh_t = jnp.asarray(w_hh).T                       # (H, H)
    # Pre-summed bias, kept f32 for the epilogue.
    b = (b_ih + b_hh).reshape(H, 1).astype(jnp.float32)

    tile_s = _pick_spatial_tile(S, N, spatial_tile_target)
    grid = (N, pl.cdiv(S, tile_s))

    vmem_limit = _vmem_limit_bytes(
        C_in, H, tile_s,
        in_bytes=np.dtype(x_nchw.dtype).itemsize,
        out_bytes=np.dtype(out_dtype).itemsize)

    kernel = functools.partial(_convrnn_cell_kernel,
                               nonlinearity=nonlinearity,
                               compute_dtype=compute_dtype)
    out = pl.pallas_call(
        kernel,
        out_shape=jax.ShapeDtypeStruct((N, H, S), out_dtype),
        grid=grid,
        in_specs=[
            pl.BlockSpec((None, C_in, tile_s), lambda n, s: (n, 0, s)),  # x
            pl.BlockSpec((None, H, tile_s), lambda n, s: (n, 0, s)),     # hx
            pl.BlockSpec((H, C_in), lambda n, s: (0, 0)),                # w_ih^T
            pl.BlockSpec((H, H), lambda n, s: (0, 0)),                   # w_hh^T
            pl.BlockSpec((H, 1), lambda n, s: (0, 0)),                   # bias
        ],
        out_specs=pl.BlockSpec((None, H, tile_s), lambda n, s: (n, 0, s)),
        compiler_params=pltpu.CompilerParams(
            dimension_semantics=("parallel", "parallel"),
            vmem_limit_bytes=vmem_limit),
    )(x_r, h_r, w_ih_t, w_hh_t, b)

    # (N, H, S) -> (N, H, Hs, Ws): free reshape, no transpose.
    return out.reshape(N, H, Hs, Ws)


def _reference(x_nchw, hx_nchw, w_ih, w_hh, b_ih, b_hh, nonlinearity="tanh"):
    """Pure-JAX reference of the 1x1-conv RNN cell (NCHW)."""
    i = jnp.einsum("nchw,cd->ndhw", x_nchw, w_ih) + b_ih.reshape(1, -1, 1, 1)
    h = jnp.einsum("nchw,cd->ndhw", hx_nchw, w_hh) + b_hh.reshape(1, -1, 1, 1)
    pre = i + h
    return jnp.tanh(pre) if nonlinearity == "tanh" else jnp.maximum(pre, 0.0)


if __name__ == "__main__":
    # Module config: input_size=4, hidden_size=32, kernel_size=(1,1), bias=True.
    N, C_in, H_hid, Hs, Ws = 2, 4, 32, 16, 16
    key = jax.random.PRNGKey(0)
    kx, kh, kwi, kwh, kbi, kbh = jax.random.split(key, 6)

    x = jax.random.normal(kx, (N, C_in, Hs, Ws), dtype=jnp.float32)
    hx = jax.random.normal(kh, (N, H_hid, Hs, Ws), dtype=jnp.float32)

    # Conv2d weights (out, in, 1, 1) stored as (in, out) matrices.
    # Kaiming-normal, mode='fan_out', relu gain: std = sqrt(2 / fan_out).
    std = (2.0 / H_hid) ** 0.5
    w_ih = std * jax.random.normal(kwi, (C_in, H_hid), dtype=jnp.float32)
    w_hh = std * jax.random.normal(kwh, (H_hid, H_hid), dtype=jnp.float32)
    # Conv2d default bias init: U(-1/sqrt(fan_in), 1/sqrt(fan_in)).
    b_ih = jax.random.uniform(kbi, (1, H_hid), dtype=jnp.float32,
                              minval=-(1.0 / C_in) ** 0.5,
                              maxval=(1.0 / C_in) ** 0.5)
    b_hh = jax.random.uniform(kbh, (1, H_hid), dtype=jnp.float32,
                              minval=-(1.0 / H_hid) ** 0.5,
                              maxval=(1.0 / H_hid) ** 0.5)

    ref = _reference(x, hx, w_ih, w_hh, b_ih, b_hh, "tanh")

    # Exact path: f32 end to end.
    out_f32 = jax.block_until_ready(
        convrnn_cell(x, hx, w_ih, w_hh, b_ih, b_hh,
                     nonlinearity="tanh", compute_dtype=jnp.float32))
    assert out_f32.shape == (N, H_hid, Hs, Ws), out_f32.shape
    assert jnp.allclose(out_f32, ref, atol=1e-5, rtol=1e-5), "f32 mismatch"

    # Performance default: bf16 MXU inputs (cast in-kernel), f32 accumulate.
    out_bf16 = jax.block_until_ready(
        convrnn_cell(x, hx, w_ih, w_hh, b_ih, b_hh, nonlinearity="tanh"))
    assert out_bf16.shape == (N, H_hid, Hs, Ws), out_bf16.shape
    assert jnp.allclose(out_bf16, ref, atol=5e-2, rtol=5e-2), "bf16 mismatch"

    # relu branch.
    ref_relu = _reference(x, hx, w_ih, w_hh, b_ih, b_hh, "relu")
    out_relu = jax.block_until_ready(
        convrnn_cell(x, hx, w_ih, w_hh, b_ih, b_hh,
                     nonlinearity="relu", compute_dtype=jnp.float32))
    assert jnp.allclose(out_relu, ref_relu, atol=1e-5, rtol=1e-5), "relu mismatch"

    # N=1 path: forces a 2-way spatial split (keeps both v7x TCs busy) and,
    # with S=200 (not a 128 multiple), exercises the padded/masked last block.
    x1 = jax.random.normal(kx, (1, C_in, 10, 20), dtype=jnp.float32)
    h1 = jax.random.normal(kh, (1, H_hid, 10, 20), dtype=jnp.float32)
    ref1 = _reference(x1, h1, w_ih, w_hh, b_ih, b_hh, "tanh")
    out1 = jax.block_until_ready(
        convrnn_cell(x1, h1, w_ih, w_hh, b_ih, b_hh,
                     nonlinearity="tanh", compute_dtype=jnp.float32))
    assert jnp.allclose(out1, ref1, atol=1e-5, rtol=1e-5), "padded-block mismatch"

    print("KERNEL_OK")
</pallas_src>

<mosaic_0001>
module attributes {stable_mosaic.version = 11 : i64} {
  func.func @_convrnn_cell_kernel(%arg0: i32, %arg1: i32, %arg2: memref<1x4x256xf32, #tpu.memory_space<vmem>>, %arg3: memref<1x32x256xf32, #tpu.memory_space<vmem>>, %arg4: memref<32x4xf32, #tpu.memory_space<vmem>>, %arg5: memref<32x32xf32, #tpu.memory_space<vmem>>, %arg6: memref<32x1xf32, #tpu.memory_space<vmem>>, %arg7: memref<1x32x256xf32, #tpu.memory_space<vmem>>) attributes {dimension_semantics = [#tpu.dimension_semantics<parallel>, #tpu.dimension_semantics<parallel>], iteration_bounds = array<i64: 2, 1>, scalar_prefetch = 0 : i64, scratch_operands = 0 : i64, tpu.core_type = #tpu.core_type<tc>, window_params = [{transform_indices = @transform_0, window_bounds = array<i64: 1, 4, 256>}, {transform_indices = @transform_1, window_bounds = array<i64: 1, 32, 256>}, {pipeline_mode = #tpu.pipeline_mode<synchronous>, transform_indices = @transform_2, window_bounds = array<i64: 32, 4>}, {pipeline_mode = #tpu.pipeline_mode<synchronous>, transform_indices = @transform_3, window_bounds = array<i64: 32, 32>}, {pipeline_mode = #tpu.pipeline_mode<synchronous>, transform_indices = @transform_4, window_bounds = array<i64: 32, 1>}, {transform_indices = @transform_5, window_bounds = array<i64: 1, 32, 256>}]} {
    %c0 = arith.constant 0 : index
    %c0_0 = arith.constant 0 : index
    %0 = vector.load %arg4[%c0, %c0_0] : memref<32x4xf32, #tpu.memory_space<vmem>>, vector<32x4xf32>
    %c0_1 = arith.constant 0 : index
    %c0_2 = arith.constant 0 : index
    %c0_3 = arith.constant 0 : index
    %1 = vector.load %arg2[%c0_1, %c0_2, %c0_3] : memref<1x4x256xf32, #tpu.memory_space<vmem>>, vector<1x4x256xf32>
    %2 = vector.shape_cast %1 : vector<1x4x256xf32> to vector<4x256xf32>
    %cst = arith.constant dense<0.000000e+00> : vector<32x256xf32>
    %3 = tpu.matmul %0, %2, %cst {dimension_numbers = #tpu.dot_dimension_numbers<[1], [0], [0], [1], [0, 0, 1, 1], [], []>} : vector<32x4xf32>, vector<4x256xf32>, vector<32x256xf32> -> vector<32x256xf32>
    %c0_4 = arith.constant 0 : index
    %c0_5 = arith.constant 0 : index
    %4 = vector.load %arg5[%c0_4, %c0_5] : memref<32x32xf32, #tpu.memory_space<vmem>>, vector<32x32xf32>
    %c0_6 = arith.constant 0 : index
    %c0_7 = arith.constant 0 : index
    %c0_8 = arith.constant 0 : index
    %5 = vector.load %arg3[%c0_6, %c0_7, %c0_8] : memref<1x32x256xf32, #tpu.memory_space<vmem>>, vector<1x32x256xf32>
    %6 = vector.shape_cast %5 : vector<1x32x256xf32> to vector<32x256xf32>
    %cst_9 = arith.constant dense<0.000000e+00> : vector<32x256xf32>
    %7 = tpu.matmul %4, %6, %cst_9 {dimension_numbers = #tpu.dot_dimension_numbers<[1], [0], [0], [1], [0, 0, 1, 1], [], []>} : vector<32x32xf32>, vector<32x256xf32>, vector<32x256xf32> -> vector<32x256xf32>
    %8 = arith.addf %3, %7 : vector<32x256xf32>
    %c0_10 = arith.constant 0 : index
    %c0_11 = arith.constant 0 : index
    %9 = vector.load %arg6[%c0_10, %c0_11] : memref<32x1xf32, #tpu.memory_space<vmem>>, vector<32x1xf32>
    %10 = vector.broadcast %9 : vector<32x1xf32> to vector<32x256xf32>
    %11 = arith.addf %8, %10 : vector<32x256xf32>
    %12 = math.tanh %11 : vector<32x256xf32>
    %c0_12 = arith.constant 0 : index
    %c0_13 = arith.constant 0 : index
    %c0_14 = arith.constant 0 : index
    %13 = vector.load %arg7[%c0_12, %c0_13, %c0_14] : memref<1x32x256xf32, #tpu.memory_space<vmem>>, vector<1x32x256xf32>
    %14 = vector.shape_cast %13 : vector<1x32x256xf32> to vector<32x256xf32>
    %15 = vector.shape_cast %12 : vector<32x256xf32> to vector<1x32x256xf32>
    tpu.vector_store %arg7[%c0_12, %c0_13, %c0_14], %15 {strides = array<i32>} : memref<1x32x256xf32, #tpu.memory_space<vmem>>, vector<1x32x256xf32>,
    return
  }
  func.func @transform_0(%arg0: i32, %arg1: i32) -> (i32, i32, i32) {
    %c0_i32 = arith.constant 0 : i32
    %c0_i32_0 = arith.constant 0 : i32
    return %arg0, %c0_i32, %arg1 : i32, i32, i32
  }
  func.func @transform_1(%arg0: i32, %arg1: i32) -> (i32, i32, i32) {
    %c0_i32 = arith.constant 0 : i32
    %c0_i32_0 = arith.constant 0 : i32
    return %arg0, %c0_i32, %arg1 : i32, i32, i32
  }
  func.func @transform_2(%arg0: i32, %arg1: i32) -> (i32, i32) {
    %c0_i32 = arith.constant 0 : i32
    %c0_i32_0 = arith.constant 0 : i32
    %c0_i32_1 = arith.constant 0 : i32
    return %c0_i32, %c0_i32_0 : i32, i32
  }
  func.func @transform_3(%arg0: i32, %arg1: i32) -> (i32, i32) {
    %c0_i32 = arith.constant 0 : i32
    %c0_i32_0 = arith.constant 0 : i32
    %c0_i32_1 = arith.constant 0 : i32
    return %c0_i32, %c0_i32_0 : i32, i32
  }
  func.func @transform_4(%arg0: i32, %arg1: i32) -> (i32, i32) {
    %c0_i32 = arith.constant 0 : i32
    %c0_i32_0 = arith.constant 0 : i32
    %c0_i32_1 = arith.constant 0 : i32
    return %c0_i32, %c0_i32_0 : i32, i32
  }
  func.func @transform_5(%arg0: i32, %arg1: i32) -> (i32, i32, i32) {
    %c0_i32 = arith.constant 0 : i32
    %c0_i32_0 = arith.constant 0 : i32
    return %arg0, %c0_i32, %arg1 : i32, i32, i32
  }
}

</mosaic_0001>

<bundles_post_ra>
// kernel: tpu_custom_call.1
= control target key start
LH: loop header
LB: loop body
LE: loop exit
PB: predicated region body
PF: predicated region fallthrough
CT: control target
= control target key end

     0   :  { %10 = vsyncpa [#allocation3], 0  ;;  %s1209_s0 = inlined_call_operand.vmem [shape: f32[2,4,256], index: 0, kind: input, shape index: {}]   ;;  %s1210_s1 = inlined_call_operand.hbm [shape: f32[2,32,256], index: 1, kind: input, shape index: {}]   ;;  %s1211_s2 = inlined_call_operand.vmem [shape: f32[32,4], index: 2, kind: input, shape index: {}]   ;;  %s1212_s3 = inlined_call_operand.vmem [shape: f32[32,32], index: 3, kind: input, shape index: {}]   ;;  %s1213_s4 = inlined_call_operand.vmem [shape: f32[32,1], index: 4, kind: input, shape index: {}]   ;;  %s1214_s5 = inlined_call_operand.hbm [shape: f32[2,32,256], index: 5, kind: output, shape index: {}]  }
   0x1   :  { %12 = vsyncpa [#allocation3 + $0x1], 0 }
   0x2   :  { %13 = vsyncpa [#allocation4], 0 }
   0x3   :  { %15 = vsyncpa [#allocation4 + $0x1], 0  ;;  %s981_s18 = smov 0   ;;  %s983_s19 = smov 0  }
   0x4   :  { %s985_s20 = smov 0   ;;  %s987_s21 = smov 0  }
   0x5   :  { %s989_s22 = smov 0   ;;  %s991_s23 = smov 0  }
   0x6 LB: > { %s696_s24 = sadd.s32 4294967295, %s941_s23   ;;  %s697_s25 = sadd.s32 4294967294, %s941_s23   ;;  %s941_s23 = sphi %s991_s23, %s21_s23   ;;  %s937_s22 = sphi %s989_s22, %s1229_s22   ;;  %s933_s21 = sphi %s987_s21, %s1228_s21   ;;  %s929_s20 = sphi %s985_s20, %s1227_s20   ;;  %s925_s19 = sphi %s983_s19, %s1226_s19   ;;  %s921_s18 = sphi %s981_s18, %s1225_s18  }
   0x7   : > { %s33_s26 = sadd.s32 1, %s937_s22  ;;  %s70_s27 = sadd.s32 1, %s929_s20 }
   0x8   : > { %p35_p0 = scmp.ge.s32.totalorder %s33_s26, 2  ;;  %p77_p1 = scmp.ne.s32.totalorder %s929_s20, %s925_s19 }
   0x9   : > { %p78_p2 = scmp.eq.s32.totalorder %s941_s23, 0  ;;  %p83_p3 = scmp.ne.s32.totalorder %s925_s19, %s921_s18 }
   0xa   : > { %s1231_s26 = smov (%p35_p0, %s33_s26), 0  ;;  %p84_p5 = scmp.eq.s32.totalorder %s696_s24, 0 }
   0xb   : > { %p1022_p4 = por %p78_p2, %p77_p1  ;;  %s65_s29 = ssub.s32 %s937_s22, %s1231_s26 }
   0xc   : > { %p172_p6 = scmp.eq.s32.totalorder %s696_s24, 1  ;;  %p68_p7 = scmp.eq.s32.totalorder %s65_s29, 0 }
   0xd   : > { %p1028_p8 = por %p84_p5, %p83_p3  ;;  %p178_p10 = scmp.eq.s32.totalorder %s697_s25, 1 }
   0xe   : > { %p1032_p9 = por %p172_p6, %p77_p1  ;;  %p754_p13 = scmp.lt.s32.totalorder %s941_s23, 2 }
   0xf   : > { %s1037_s7 = scalar_select %p68_p7, %s929_s20, %s70_s27  }
  0x10   : > { %s1218_s6 = scalar_select %p1032_p9, 1, 0 }
  0x11   : > { %p1039_p11 = por %p178_p10, %p83_p3  ;;  %s220_s9 = sand.u32 1, %s929_s20  }
  0x12   : > { %s700_s10 = sshll.u32 %s220_s9, 6  ;;  %s723_s11 = sshll.u32 %s937_s22, 10 }
  0x13   : > { %s1219_s8 = scalar_select %p1039_p11, 1, 0 }
  0x14   : > { %s1050_s14 = scalar_lea.hbm %s1210_s1, %s723_s11  ;;  %s224_s15 = scalar_lea.vmem [#allocation2], %s700_s10 }
  0x15   : > { %s233_s16 = sshll.u32 %s224_s15, 4  ;;  %p1056_p0 = pnand %p754_p13, %p1022_p4  ;;  %s1052_s16 = int_to_ptr.vmem [resolvable:$true] %s233_s16 }
  0x16   : > { %s1061_s24 = scalar_lea.sflag [#allocation3], %s220_s9  ;;  %s829_s25 = scalar_lea.hbm %s1050_s14, 1024 }
  0x17   : > { %p830_p2 = scmp.ne.s32.totalorder %s1050_s14, %s829_s25  ;;  %p831_p3 = pneg %p1056_p0 }
  0x18   : > { %s834_s28 = scalar_lea.hbm %s1210_s1, 2048  ;;  %p835_p4 = scmp.lt.u32.totalorder %s1050_s14, %s1210_s1 }
  0x19   : > { %p832_p5 = pnand %p831_p3, %p830_p2  ;;  %p836_p7 = scmp.lt.u32.totalorder %s834_s28, %s829_s25 }
  0x1a   : > { %p838_p13 = scmp.lt.u32.totalorder %s829_s25, %s1050_s14 }
  0x1b   : > { %p833_p6 = pneg %p832_p5  ;;  %p837_p10 = por %p836_p7, %p835_p4 }
  0x1d   : > { %p839_p12 = por %p838_p13, %p837_p10 }
  0x1f   : > { %p840_p1 = pnand %p839_p12, %p833_p6 }
  0x21   : > { %843 = shalt.err (!%p840_p1)
}
  0x22   : > { %s844_s9 = scalar_lea.vmem %s1052_s16, 1024  ;;  %s943_s12 = smov [#allocation2]  }
  0x23   : > { %p845_p2 = scmp.ne.s32.totalorder %s1052_s16, %s844_s9  ;;  %s849_s13 = sshll.u32 %s943_s12, 4  ;;  %s850_s13 = int_to_ptr.vmem [resolvable:$false] %s849_s13 }
  0x24   : > { %s851_s15 = scalar_lea.vmem %s850_s13, 2048  ;;  %p852_p9 = scmp.lt.s32.totalorder %s1052_s16, %s850_s13 }
  0x25   : > { %p847_p5 = pnand %p845_p2, %p831_p3  ;;  %p853_p4 = scmp.lt.s32.totalorder %s851_s15, %s844_s9 }
  0x27   : > { %p848_p11 = pneg %p847_p5  ;;  %p854_p7 = por %p853_p4, %p852_p9 }
  0x29   : > { %p855_p10 = pnand %p854_p7, %p848_p11 }
  0x2b   : > { %858 = shalt.err (!%p855_p10)
}
  0x2c   : > { %s944_s25 = smov 256   ;;  %s945_s27 = smov 16  }
  0x2d   : > { %749 = dma.hbm_to_vmem [thread:$0]  (!%p1056_p0), %s1050_s14, 1024, %s1052_s16, %s1061_s24, %s944_s25, %s944_s25, %s945_s27  }
  0x2e   : > { %p241_p12 = scmp.lt.s32.totalorder %s941_s23, 3  ;;  %p1221_p1 = scmp.ge.s32.totalorder %s941_s23, 1 }
  0x30   : > { %p242_p3 = pnand %p1221_p1, %p241_p12 }
  0x31   : > { %s1093_s29 = sand.u32 (!%p242_p3), 1, %s925_s19  }
  0x32   : > { %245 = sbr.rel (%p242_p3) target bundleno = 324 (0x144), region = 40  ;;  %s704_s28 = sshll.u32 (!%p242_p3), %s1093_s29, 6 }
  0x33   : > { %s248_s10 = scalar_lea.sflag (!%p242_p3), [#allocation3], %s1093_s29  ;;  %s251_s11 = scalar_lea.vmem (!%p242_p3), [#allocation2], %s704_s28 }
  0x39   : > { %912 = dma.done.wait (%p1028_p8), %s248_s10, 1024  }
  0x3a   : > { %914 = vsyncadd (%p1028_p8), %s248_s10, 4294966272  ;;  %p288_p9 = scmp.lt.s32.totalorder %s933_s21, 1  ;;  %v946_v0 = vmov 0.0   ;;  %v947_v1 = vmov 0   ;;  %v309_v2 = vld [vmem:[%s251_s11 + $0x8] sm:$0xff]  ;;  %v311_v3 = vld [vmem:[%s251_s11 + $0x18] sm:$0xff] }
  0x3b   : > { %502 = vmatprep.mubr.f32.mxu0 %v946_v0  ;;  %393 = vmatprep.mubr.f32.mxu1 %v946_v0  ;;  %v308_v4 = vld [vmem:[%s251_s11] sm:$0xff]  ;;  %v726_v5 = vpack.c.bf16 %v311_v3, %v309_v2  ;;  %v310_v6 = vld [vmem:[%s251_s11 + $0x10] sm:$0xff]  ;;  %v313_v7 = vld [vmem:[%s251_s11 + $0x28] sm:$0xff]  ;;  %vm433_vm0 = vcmask 1043456   ;;  %vm420_vm1 = vcmask 31744   ;;  %vm316_vm2 = vcmask 261120  }
  0x3c   : > { %s289_s14 = scalar_select %p288_p9, %s933_s21, 1  ;;  %810 = vset.pattern.permute.xlu0 %v947_v1  ;;  %811 = vset.pattern.permute.xlu1 %v947_v1  ;;  %v315_v8 = vld [vmem:[%s251_s11 + $0x38] sm:$0xff]  ;;  %v728_v9 = vpack.c.bf16 %v310_v6, %v308_v4  ;;  %v312_v11 = vld [vmem:[%s251_s11 + $0x20] sm:$0xff]  ;;  %v314_v12 = vld [vmem:[%s251_s11 + $0x30] sm:$0xff] }
  0x3d   : > { %v730_v10 = vpack.c.bf16 %v315_v8, %v313_v7  ;;  %727 = vmatprep.subr.bf16.mxu1 %v726_v5  ;;  %v732_v15 = vpack.c.bf16 %v314_v12, %v312_v11  ;;  %v299_v16 = vld [vmem:[%s1211_s2] sm:$0xff]  ;;  %v529_v18 = vld [vmem:[%s1213_s4 + $0x10] sm:$0xff]  ;;  %v528_v19 = vld [vmem:[%s1213_s4 + $0x8] sm:$0xff]  ;;  %s286_s24 = scalar_lea.vmem [#allocation5], %s704_s28  ;;  %s576_s15 = scalar_lea.sflag [#allocation4], %s1093_s29 }
  0x3e   : > { %s724_s16 = sshll.u32 %s289_s14, 3  ;;  %729 = vmatpush1.bf16.msra.mxu1 %v728_v9  ;;  %v527_v17 = vld [vmem:[%s1213_s4] sm:$0xff]  ;;  %543 = vperm.xlu1 %811, %v529_v18   ;;  %v300_v21 = vld [vmem:[%s1211_s2 + $0x8] sm:$0xff]  ;;  %v530_v22 = vld [vmem:[%s1213_s4 + $0x18] sm:$0xff]  ;;  %s591_s30 = sshll.u32 %s286_s24, 4  ;;  %s1160_s30 = int_to_ptr.vmem [resolvable:$true] %s591_s30 }
  0x3f   : > { %s295_s9 = scalar_lea.vmem %s1209_s0, %s724_s16  ;;  %731 = vmatprep.subr.bf16.mxu1 %v730_v10  ;;  %533 = vperm.xlu0 %810, %v527_v17   ;;  %v304_v20 = vld [vmem:[%s1212_s3] sm:$0xff]  ;;  %v305_v23 = vld [vmem:[%s1212_s3 + $0x8] sm:$0xff]  ;;  %v301_v24 = vld [vmem:[%s1211_s2 + $0x10] sm:$0xff]  ;;  %p1222_p11 = scmp.ne.s32.totalorder %s1218_s6, 0 }
  0x40   : > { %v303_v13 = vld [vmem:[%s295_s9] sm:$0xff]  ;;  %v306_v25 = vld [vmem:[%s1212_s3 + $0x10] sm:$0xff]  ;;  %v302_v26 = vld [vmem:[%s1211_s2 + $0x18] sm:$0xff]  ;;  %s725_s9 = sshll.u32 %s933_s21, 10  ;;  %s859_s21 = scalar_lea.vmem %s1160_s30, 1024 }
  0x41   : > { %v419_v14 = vcombine.high %v303_v13, %v303_v13  ;;  %v307_v27 = vld [vmem:[%s1212_s3 + $0x18] sm:$0xff]  ;;  %s1158_s28 = scalar_lea.hbm %s1214_s5, %s725_s9  ;;  %p860_p8 = scmp.ne.s32.totalorder %s1160_s30, %s859_s21 }
  0x42   : > { %733 = vmatpush1.bf16.msra.mxu1 %v732_v15  ;;  %548 = vperm.xlu1 %811, %v530_v22   ;;  %s948_s25 = smov [#allocation5]  }
  0x43   : > { %712 = vmatprep.subr.msk.mxu0 %vm433_vm0, %v419_v14  ;;  %538 = vperm.xlu0 %810, %v528_v19   ;;  %p861_p0 = pnand %p860_p8, %p1222_p11  ;;  %s863_s27 = sshll.u32 %s948_s25, 4  ;;  %s864_s27 = int_to_ptr.vmem [resolvable:$false] %s863_s27 }
  0x44   : > { %713 = vmatpush1.msk.msra.mxu0 %vm433_vm0, %v303_v13  ;;  %s865_s10 = scalar_lea.vmem %s864_s27, 2048  ;;  %p866_p13 = scmp.lt.s32.totalorder %s1160_s30, %s864_s27 }
  0x45   : > { %714 = vmatmul.mubr.msk.f32.vlgmr.msra.gmra.mrb[0].mxu0 %vm420_vm1, %v299_v16  ;;  %708 = vmatmul.mubr.msk.f32.vlgmr.msra.gmra.mrb[0].mxu1 %vm316_vm2, %v304_v20  ;;  %p862_p6 = pneg %p861_p0  ;;  %p867_p2 = scmp.lt.s32.totalorder %s865_s10, %s859_s21 }
  0x46   : > { %508 = vmatprep.mubr.f32.mxu0 %v946_v0  ;;  %399 = vmatprep.mubr.f32.mxu1 %v946_v0 }
  0x47   : > { %p868_p5 = por %p867_p2, %p866_p13 }
  0x49   : > { %715 = vmatmul.mubr.msk.f32.gmra.mrb[2].mxu0 %vm420_vm1, %v300_v21  ;;  %709 = vmatmul.mubr.msk.f32.gmra.mrb[2].mxu1 %vm316_vm2, %v305_v23  ;;  %p869_p4 = pnand %p868_p5, %p862_p6 }
  0x4a   : > { %514 = vmatprep.mubr.f32.mxu0 %v946_v0  ;;  %405 = vmatprep.mubr.f32.mxu1 %v946_v0 }
  0x4d   : > { %716 = vmatmul.mubr.msk.f32.gmra.mrb[4].mxu0 %vm420_vm1, %v301_v24  ;;  %710 = vmatmul.mubr.msk.f32.gmra.mrb[4].mxu1 %vm316_vm2, %v306_v25 }
  0x4e   : > { %520 = vmatprep.mubr.f32.mxu0 %v946_v0  ;;  %411 = vmatprep.mubr.f32.mxu1 %v946_v0 }
  0x51   : > { %717 = vmatmul.mubr.msk.f32.gmra.mrb[6].mxu0 %vm420_vm1, %v302_v26  ;;  %711 = vmatmul.mubr.msk.f32.gmra.mrb[6].mxu1 %vm316_vm2, %v307_v27 }
  0xbd   : > { %v544_v47 = vpop.permute.xlu1 %543 }
  0xbe   : > { %v534_v30 = vpop.permute.xlu0 %533 }
  0xc1   : > { %v549_v60 = vpop.permute.xlu1 %548 }
  0xc2   : > { %v539_v38 = vpop.permute.xlu0 %538 }
 0x118   : > { %v504_v28 = vpop.f32.mrb[0].mxu0  ;;  %v395_v31 = vpop.f32.mrb[0].mxu1 }
 0x119   : > { %v506_v29 = vpop.f32.mrb[1].mxu0  ;;  %v505_v33 = vadd.f32 %v504_v28, %v395_v31  ;;  %v397_v34 = vpop.f32.mrb[1].mxu1 }
 0x11a   : > { %v507_v36 = vadd.f32 %v506_v29, %v397_v34 }
 0x11b   : > { %v551_v37 = vadd.f32 %v534_v30, %v505_v33 }
 0x11c   : > { %v510_v32 = vpop.f32.mrb[2].mxu0  ;;  %v552_v39 = vadd.f32 %v534_v30, %v507_v36  ;;  %v401_v40 = vpop.f32.mrb[2].mxu1 }
 0x11d   : > { %v512_v35 = vpop.f32.mrb[3].mxu0  ;;  %813 = vtanh.f32 %v551_v37  ;;  %v511_v42 = vadd.f32 %v510_v32, %v401_v40  ;;  %v403_v43 = vpop.f32.mrb[3].mxu1 }
 0x11e   : > { %815 = vtanh.f32 %v552_v39  ;;  %v513_v45 = vadd.f32 %v512_v35, %v403_v43 }
 0x11f   : > { %v553_v46 = vadd.f32 %v539_v38, %v511_v42 }
 0x120   : > { %v516_v41 = vpop.f32.mrb[4].mxu0  ;;  %v554_v48 = vadd.f32 %v539_v38, %v513_v45  ;;  %v407_v49 = vpop.f32.mrb[4].mxu1 }
 0x121   : > { %v518_v44 = vpop.f32.mrb[5].mxu0  ;;  %817 = vtanh.f32 %v553_v46  ;;  %v517_v51 = vadd.f32 %v516_v41, %v407_v49  ;;  %v409_v52 = vpop.f32.mrb[5].mxu1 }
 0x122   : > { %819 = vtanh.f32 %v554_v48  ;;  %v519_v54 = vadd.f32 %v518_v44, %v409_v52 }
 0x123   : > { %v555_v55 = vadd.f32 %v544_v47, %v517_v51 }
 0x124   : > { %v522_v50 = vpop.f32.mrb[6].mxu0  ;;  %v556_v56 = vadd.f32 %v544_v47, %v519_v54  ;;  %v413_v57 = vpop.f32.mrb[6].mxu1 }
 0x125   : > { %v524_v53 = vpop.f32.mrb[7].mxu0  ;;  %821 = vtanh.f32 %v555_v55  ;;  %v523_v58 = vadd.f32 %v522_v50, %v413_v57  ;;  %v415_v59 = vpop.f32.mrb[7].mxu1 }
 0x126   : > { %823 = vtanh.f32 %v556_v56  ;;  %v525_v61 = vadd.f32 %v524_v53, %v415_v59 }
 0x127   : > { %v814_v62 = vpop.eup %813  ;;  %v557_v63 = vadd.f32 %v549_v60, %v523_v58 }
 0x128   : > { %v816_v0 = vpop.eup %815  ;;  %567 = vst [vmem:[%s286_s24] sm:$0xff] %v814_v62  ;;  %v558_v1 = vadd.f32 %v549_v60, %v525_v61 }
 0x129   : > { %568 = vst [vmem:[%s286_s24 + $0x8] sm:$0xff] %v816_v0  ;;  %825 = vtanh.f32 %v557_v63 }
 0x12a   : > { %827 = vtanh.f32 %v558_v1 }
 0x12b   : > { %v818_v2 = vpop.eup %817 }
 0x12c   : > { %v820_v3 = vpop.eup %819  ;;  %569 = vst [vmem:[%s286_s24 + $0x10] sm:$0xff] %v818_v2 }
 0x12d   : > { %570 = vst [vmem:[%s286_s24 + $0x18] sm:$0xff] %v820_v3 }
 0x12f   : > { %v822_v4 = vpop.eup %821 }
 0x130   : > { %v824_v5 = vpop.eup %823  ;;  %571 = vst [vmem:[%s286_s24 + $0x20] sm:$0xff] %v822_v4 }
 0x131   : > { %572 = vst [vmem:[%s286_s24 + $0x28] sm:$0xff] %v824_v5 }
 0x133   : > { %v826_v6 = vpop.eup %825 }
 0x134   : > { %v828_v7 = vpop.eup %827  ;;  %573 = vst [vmem:[%s286_s24 + $0x30] sm:$0xff] %v826_v6 }
 0x135   : > { %574 = vst [vmem:[%s286_s24 + $0x38] sm:$0xff] %v828_v7 }
 0x136   : > { %872 = shalt.err (!%p869_p4)
}
 0x137   : > { %s873_s11 = scalar_lea.hbm %s1158_s28, 1024  ;;  %s877_s17 = scalar_lea.hbm %s1214_s5, 2048 }
 0x138   : > { %p874_p7 = scmp.ne.s32.totalorder %s1158_s28, %s873_s11  ;;  %p878_p1 = scmp.lt.u32.totalorder %s1158_s28, %s1214_s5 }
 0x139   : > { %p879_p3 = scmp.lt.u32.totalorder %s877_s17, %s873_s11  ;;  %p881_p8 = scmp.lt.u32.totalorder %s873_s11, %s1158_s28 }
 0x13a   : > { %p875_p10 = pnand %p874_p7, %p1222_p11 }
 0x13b   : > { %p880_p9 = por %p879_p3, %p878_p1 }
 0x13c   : > { %p876_p12 = pneg %p875_p10 }
 0x13d   : > { %p882_p0 = por %p881_p8, %p880_p9 }
 0x13f   : > { %p883_p6 = pnand %p882_p0, %p876_p12 }
 0x141   : > { %886 = shalt.err (!%p883_p6)
}
 0x142   : > { %s949_s12 = smov 256   ;;  %s950_s13 = smov 16  }
 0x143   : > { %744 = dma.vmem_to_hbm [thread:$0]  (%p1222_p11), %s1160_s30, 1024, %s1158_s28, %s576_s15, %s949_s12, %s949_s12, %s950_s13  }
 0x144 PF: > { %s606_s21 = sand.u32 1, %s921_s18   ;;  %p1223_p13 = scmp.ne.s32.totalorder %s1219_s8, 0 }
 0x145   : > { %p1224_p2 = scmp.ge.s32.totalorder %s941_s23, 2  ;;  %s607_s25 = scalar_lea.sflag [#allocation4], %s606_s21 }
 0x147   : > { %p751_p5 = pnand %p1224_p2, %p1223_p13 }
 0x149   : > { %916 = dma.done.wait (!%p751_p5), %s607_s25, 1024  }
 0x14a   : > { %918 = vsyncadd (!%p751_p5), %s607_s25, 4294966272  ;;  %s21_s23 = sadd.s32 1, %s941_s23   ;;  %s1225_s18 = smov %s925_s19 }
 0x14b   : > { %p18_p4 = scmp.ge.s32.totalorder %s21_s23, 4   ;;  %s1226_s19 = smov %s929_s20 }
 0x14c   : > { %s1227_s20 = smov %s1037_s7  ;;  %s1228_s21 = smov %s937_s22 }
 0x14d   : > { %s1229_s22 = smov %s1231_s26  ;;  %20 = sbr.rel (!%p18_p4) target bundleno = 6 (0x6), region = 88 }
 0x154   :  { %612 = vsyncpa [#allocation3], 1 }
 0x155   :  { %614 = vsyncpa [#allocation3 + $0x1], 1 }
 0x156   :  { %615 = vsyncpa [#allocation4], 1 }
 0x157   :  { %617 = vsyncpa [#allocation4 + $0x1], 1 }

</bundles_post_ra>
